<compile_context>
chip_gen: v5e
topology: v5e:2x2
jax: 0.10.0
libtpu: 0.0.40
codegen_flags: <defaults>
</compile_context>

<pallas_src>
import jax
import jax.numpy as jnp
import numpy as np
from jax.experimental import pallas as pl
from jax.experimental.pallas import tpu as pltpu

# ---- "configs" (deterministic, small) --------------------------------------
SEQ_LEN = 16      # configs.seq_len
PRED_LEN = 8      # configs.pred_len
ENC_IN = 4        # configs.enc_in  (input channels)
C_OUT = 3         # configs.c_out
HIDDEN = 128      # fc1 out features (non-m4 branch)
BATCH = 2
BATCH_PAD = 8     # pad batch to a full sublane tile
CONV1_OUT = 16
CONV2_OUT = 32
OUT_DIM = PRED_LEN * C_OUT   # 24 (= fc2 out features)
OUT_PAD = 128                # lane-dense padded fc2 output width

# TODO(synk): kd_method == 'features' q/k/v conv+fc branch is config-gated and not
# exercised for this config; only the plain forecast path is implemented.
# TODO(synk): if this forward is called repeatedly, weights could be kept resident
# across calls (cross-call prefetch) and calls batched to fill the MXU M dimension.


# ---------------------------------------------------------------------------
# Single fused kernel: conv1(+ReLU) -> conv2(+ReLU) -> fc1(+ReLU) -> fc2
# Each conv is one matmul against a block-Toeplitz expansion of the conv weight.
# All activations are [Bp, lane-dense] rows: 64 -> 256 -> 512 -> 128 -> 128.
# ---------------------------------------------------------------------------
def fused_kernel(x_ref, t1_ref, b1_ref, t2_ref, b2_ref,
                 w3_ref, b3_ref, w4_ref, b4_ref, out_ref):
    # conv1 + ReLU: [Bp, L*C] @ [L*C, 16*L]
    h1 = jnp.dot(x_ref[...], t1_ref[...], preferred_element_type=jnp.float32)
    h1 = jnp.maximum(h1 + b1_ref[...], 0.0)                       # [Bp, 16*L]
    # conv2 + ReLU: [Bp, 16*L] @ [16*L, 32*L]  (output already in flatten order)
    h2 = jnp.dot(h1, t2_ref[...], preferred_element_type=jnp.float32)
    h2 = jnp.maximum(h2 + b2_ref[...], 0.0)                       # [Bp, 32*L]
    # fc1 + ReLU: [Bp, 512] @ [512, 128]
    z1 = jnp.dot(h2, w3_ref[...], preferred_element_type=jnp.float32)
    z1 = jnp.maximum(z1 + b3_ref[...], 0.0)                       # [Bp, 128]
    # fc2 (padded to 128 output lanes -> unmasked store; wrapper slices to 24)
    out_ref[...] = jnp.dot(z1, w4_ref[...],
                           preferred_element_type=jnp.float32) + b4_ref[...]


def fused_forward(x_flat, p):
    Bp = x_flat.shape[0]

    def full(shape):
        return pl.BlockSpec(shape, lambda i: (0,) * len(shape))

    return pl.pallas_call(
        fused_kernel,
        out_shape=jax.ShapeDtypeStruct((Bp, OUT_PAD), jnp.float32),
        grid_spec=pltpu.PrefetchScalarGridSpec(
            num_scalar_prefetch=0,
            grid=(1,),
            in_specs=[
                full(x_flat.shape),            # [Bp, L*C]
                full(p['t1'].shape),           # [L*C, 16*L]
                full(p['b1'].shape),           # [1, 16*L]
                full(p['t2'].shape),           # [16*L, 32*L]
                full(p['b2'].shape),           # [1, 32*L]
                full(p['fc1_wT'].shape),       # [32*L, 128]
                full(p['fc1_b'].shape),        # [1, 128]
                full(p['fc2_wT_pad'].shape),   # [128, 128]
                full(p['fc2_b_pad'].shape),    # [1, 128]
            ],
            out_specs=full((Bp, OUT_PAD)),
        ),
        compiler_params=pltpu.CompilerParams(dimension_semantics=("arbitrary",)),
    )(x_flat, p['t1'], p['b1'], p['t2'], p['b2'],
      p['fc1_wT'], p['fc1_b'], p['fc2_wT_pad'], p['fc2_b_pad'])


# ---------------------------------------------------------------------------
# Param preprocessing (done once at init, on host)
# ---------------------------------------------------------------------------
def conv1d_same_toeplitz(w, L, rows_time_major):
    """Block-Toeplitz expansion of a PyTorch Conv1d weight (stride 1, 'same' pad).

    w: [O, C, K].  Returns T with y_flat = x_flat @ T, where
      y_flat[b, o*L + l]  (channel-major: matches torch .view(B,-1) of [B,O,L])
      x_flat[b, l*C + c]  if rows_time_major  (matches x_enc.reshape(B, L*C))
      x_flat[b, c*L + l]  otherwise           (matches NCL flatten)
    """
    O, C, K = w.shape
    pad = (K - 1) // 2
    w_np = np.asarray(w, np.float32)
    lp = np.arange(L)
    l = np.arange(L)
    T = np.zeros((C, L, O, L), np.float32)          # [c, lp, o, l]
    for k in range(K):
        mask = (lp[:, None] == (l[None, :] + k - pad)).astype(np.float32)  # [L, L]
        T += w_np[:, :, k].T[:, None, :, None] * mask[None, :, None, :]
    if rows_time_major:
        T = T.transpose(1, 0, 2, 3)                 # [lp, c, o, l]
    return jnp.asarray(T.reshape(C * L, O * L))


def init_params(key):
    ks = jax.random.split(key, 8)
    raw = {
        # PyTorch layouts: Conv1d weight [out, in, k]; Linear weight [out, in]
        'w1': jax.random.normal(ks[0], (CONV1_OUT, ENC_IN, 3), jnp.float32) * 0.30,
        'b1': jax.random.normal(ks[1], (CONV1_OUT,), jnp.float32) * 0.10,
        'w2': jax.random.normal(ks[2], (CONV2_OUT, CONV1_OUT, 3), jnp.float32) * 0.15,
        'b2': jax.random.normal(ks[3], (CONV2_OUT,), jnp.float32) * 0.10,
        'fc1_w': jax.random.normal(ks[4], (HIDDEN, CONV2_OUT * SEQ_LEN), jnp.float32) * 0.05,
        'fc1_b': jax.random.normal(ks[5], (HIDDEN,), jnp.float32) * 0.10,
        'fc2_w': jax.random.normal(ks[6], (OUT_DIM, HIDDEN), jnp.float32) * 0.10,
        'fc2_b': jax.random.normal(ks[7], (OUT_DIM,), jnp.float32) * 0.10,
    }

    # fc2 padded to 128 output lanes (zeros beyond column 24)
    fc2_wT_pad = jnp.zeros((HIDDEN, OUT_PAD), jnp.float32).at[:, :OUT_DIM].set(raw['fc2_w'].T)
    fc2_b_pad = jnp.zeros((1, OUT_PAD), jnp.float32).at[:, :OUT_DIM].set(raw['fc2_b'])

    kernel_params = {
        # conv1: input rows are (l, c) so x_enc.reshape(B, L*C) feeds it directly
        't1': conv1d_same_toeplitz(raw['w1'], SEQ_LEN, rows_time_major=True),    # [L*C, 16*L]
        'b1': jnp.repeat(raw['b1'], SEQ_LEN).reshape(1, CONV1_OUT * SEQ_LEN),    # [1, 16*L]
        # conv2: input rows are (c, l) == conv1's (o, l) output order
        't2': conv1d_same_toeplitz(raw['w2'], SEQ_LEN, rows_time_major=False),   # [16*L, 32*L]
        'b2': jnp.repeat(raw['b2'], SEQ_LEN).reshape(1, CONV2_OUT * SEQ_LEN),    # [1, 32*L]
        'fc1_wT': raw['fc1_w'].T,                                                # [32*L, 128]
        'fc1_b': raw['fc1_b'].reshape(1, HIDDEN),
        'fc2_wT_pad': fc2_wT_pad,                                                # [128, 128]
        'fc2_b_pad': fc2_b_pad,                                                  # [1, 128]
    }
    return raw, kernel_params


# ---------------------------------------------------------------------------
# Model forward (Pallas-backed) and pure-JAX reference
# ---------------------------------------------------------------------------
def model_forward(params, x_enc, x_mark_enc=None, x_dec=None, x_mark_dec=None,
                  mask=None):
    # x_enc: [B, seq_len, enc_in]; x_mark_enc / x_dec / x_mark_dec are ignored
    # (exactly as in the PyTorch forward for this config).
    B = x_enc.shape[0]
    # permute(0,2,1) is folded into t1's row ordering -> only a free reshape here.
    x_flat = x_enc.reshape(B, SEQ_LEN * ENC_IN)            # [B, L*C]
    # Pad batch rows to a full sublane tile so the kernel works on (8, lane-dense)
    # tiles end to end (padded rows are garbage-but-harmless and sliced off below).
    pad_rows = max(BATCH_PAD - B, 0)
    x_pad = jnp.pad(x_flat, ((0, pad_rows), (0, 0))) if pad_rows else x_flat
    out_pad = fused_forward(x_pad, params)                 # [Bp, 128]
    out = out_pad[:B, :OUT_DIM]                            # [B, pred_len*c_out]
    dec_out = out.reshape(B, -1, C_OUT)                    # view(B, -1, c_out)
    return dec_out[:, -PRED_LEN:, :]                       # [B, pred_len, c_out]


def ref_forward(raw, x_enc):
    x = jnp.transpose(x_enc, (0, 2, 1))
    xp = jnp.pad(x, ((0, 0), (0, 0), (1, 1)))
    L = SEQ_LEN
    h1 = sum(jnp.einsum('oi,bil->bol', raw['w1'][:, :, k], xp[:, :, k:k + L])
             for k in range(3)) + raw['b1'][None, :, None]
    h1 = jax.nn.relu(h1)
    h1p = jnp.pad(h1, ((0, 0), (0, 0), (1, 1)))
    h2 = sum(jnp.einsum('oi,bil->bol', raw['w2'][:, :, k], h1p[:, :, k:k + L])
             for k in range(3)) + raw['b2'][None, :, None]
    conv_out = jax.nn.relu(h2)
    flat = conv_out.reshape(conv_out.shape[0], -1)
    z1 = jax.nn.relu(flat @ raw['fc1_w'].T + raw['fc1_b'])
    z2 = z1 @ raw['fc2_w'].T + raw['fc2_b']
    dec = z2.reshape(z2.shape[0], -1, C_OUT)
    return dec[:, -PRED_LEN:, :]


if __name__ == "__main__":
    key = jax.random.PRNGKey(0)
    k_par, k_x, k_xm, k_xd, k_xmd = jax.random.split(key, 5)

    raw, params = init_params(k_par)

    x_enc = jax.random.normal(k_x, (BATCH, SEQ_LEN, ENC_IN), jnp.float32)
    x_mark_enc = jax.random.normal(k_xm, (BATCH, SEQ_LEN, ENC_IN), jnp.float32)   # unused
    x_dec = jax.random.normal(k_xd, (BATCH, PRED_LEN, ENC_IN), jnp.float32)       # unused
    x_mark_dec = jax.random.normal(k_xmd, (BATCH, PRED_LEN, ENC_IN), jnp.float32) # unused

    fwd = jax.jit(model_forward)
    out = fwd(params, x_enc, x_mark_enc, x_dec, x_mark_dec)
    out = jax.block_until_ready(out)

    ref = jax.block_until_ready(ref_forward(raw, x_enc))

    assert out.shape == (BATCH, PRED_LEN, C_OUT), out.shape
    np.testing.assert_allclose(np.asarray(out), np.asarray(ref),
                               rtol=1e-2, atol=1e-3)
    print("KERNEL_OK")
</pallas_src>

<mosaic_0001>
module attributes {stable_mosaic.version = 11 : i64} {
  func.func @fused_kernel(%arg0: i32, %arg1: memref<8x64xf32, #tpu.memory_space<vmem>>, %arg2: memref<64x256xf32, #tpu.memory_space<vmem>>, %arg3: memref<1x256xf32, #tpu.memory_space<vmem>>, %arg4: memref<256x512xf32, #tpu.memory_space<vmem>>, %arg5: memref<1x512xf32, #tpu.memory_space<vmem>>, %arg6: memref<512x128xf32, #tpu.memory_space<vmem>>, %arg7: memref<1x128xf32, #tpu.memory_space<vmem>>, %arg8: memref<128x128xf32, #tpu.memory_space<vmem>>, %arg9: memref<1x128xf32, #tpu.memory_space<vmem>>, %arg10: memref<8x128xf32, #tpu.memory_space<vmem>>) attributes {dimension_semantics = [#tpu.dimension_semantics<arbitrary>], iteration_bounds = array<i64: 1>, scalar_prefetch = 0 : i64, scratch_operands = 0 : i64, tpu.core_type = #tpu.core_type<tc>, window_params = [{pipeline_mode = #tpu.pipeline_mode<synchronous>, transform_indices = @transform_0, window_bounds = array<i64: 8, 64>}, {pipeline_mode = #tpu.pipeline_mode<synchronous>, transform_indices = @transform_1, window_bounds = array<i64: 64, 256>}, {pipeline_mode = #tpu.pipeline_mode<synchronous>, transform_indices = @transform_2, window_bounds = array<i64: 1, 256>}, {pipeline_mode = #tpu.pipeline_mode<synchronous>, transform_indices = @transform_3, window_bounds = array<i64: 256, 512>}, {pipeline_mode = #tpu.pipeline_mode<synchronous>, transform_indices = @transform_4, window_bounds = array<i64: 1, 512>}, {pipeline_mode = #tpu.pipeline_mode<synchronous>, transform_indices = @transform_5, window_bounds = array<i64: 512, 128>}, {pipeline_mode = #tpu.pipeline_mode<synchronous>, transform_indices = @transform_6, window_bounds = array<i64: 1, 128>}, {pipeline_mode = #tpu.pipeline_mode<synchronous>, transform_indices = @transform_7, window_bounds = array<i64: 128, 128>}, {pipeline_mode = #tpu.pipeline_mode<synchronous>, transform_indices = @transform_8, window_bounds = array<i64: 1, 128>}, {pipeline_mode = #tpu.pipeline_mode<synchronous>, transform_indices = @transform_9, window_bounds = array<i64: 8, 128>}]} {
    %c0 = arith.constant 0 : index
    %c0_0 = arith.constant 0 : index
    %0 = vector.load %arg1[%c0, %c0_0] : memref<8x64xf32, #tpu.memory_space<vmem>>, vector<8x64xf32>
    %c0_1 = arith.constant 0 : index
    %c0_2 = arith.constant 0 : index
    %1 = vector.load %arg2[%c0_1, %c0_2] : memref<64x256xf32, #tpu.memory_space<vmem>>, vector<64x256xf32>
    %cst = arith.constant dense<0.000000e+00> : vector<8x256xf32>
    %2 = tpu.matmul %0, %1, %cst {dimension_numbers = #tpu.dot_dimension_numbers<[1], [0], [0], [1], [0, 0, 1, 1], [], []>} : vector<8x64xf32>, vector<64x256xf32>, vector<8x256xf32> -> vector<8x256xf32>
    %c0_3 = arith.constant 0 : index
    %c0_4 = arith.constant 0 : index
    %3 = vector.load %arg3[%c0_3, %c0_4] : memref<1x256xf32, #tpu.memory_space<vmem>>, vector<1x256xf32>
    %4 = vector.broadcast %3 : vector<1x256xf32> to vector<8x256xf32>
    %5 = arith.addf %2, %4 : vector<8x256xf32>
    %cst_5 = arith.constant 0.000000e+00 : f32
    %6 = vector.broadcast %cst_5 : f32 to vector<8x256xf32>
    %7 = arith.maximumf %5, %6 : vector<8x256xf32>
    %c0_6 = arith.constant 0 : index
    %c0_7 = arith.constant 0 : index
    %8 = vector.load %arg4[%c0_6, %c0_7] : memref<256x512xf32, #tpu.memory_space<vmem>>, vector<256x512xf32>
    %cst_8 = arith.constant dense<0.000000e+00> : vector<8x512xf32>
    %9 = tpu.matmul %7, %8, %cst_8 {dimension_numbers = #tpu.dot_dimension_numbers<[1], [0], [0], [1], [0, 0, 1, 1], [], []>} : vector<8x256xf32>, vector<256x512xf32>, vector<8x512xf32> -> vector<8x512xf32>
    %c0_9 = arith.constant 0 : index
    %c0_10 = arith.constant 0 : index
    %10 = vector.load %arg5[%c0_9, %c0_10] : memref<1x512xf32, #tpu.memory_space<vmem>>, vector<1x512xf32>
    %11 = vector.broadcast %10 : vector<1x512xf32> to vector<8x512xf32>
    %12 = arith.addf %9, %11 : vector<8x512xf32>
    %cst_11 = arith.constant 0.000000e+00 : f32
    %13 = vector.broadcast %cst_11 : f32 to vector<8x512xf32>
    %14 = arith.maximumf %12, %13 : vector<8x512xf32>
    %c0_12 = arith.constant 0 : index
    %c0_13 = arith.constant 0 : index
    %15 = vector.load %arg6[%c0_12, %c0_13] : memref<512x128xf32, #tpu.memory_space<vmem>>, vector<512x128xf32>
    %cst_14 = arith.constant dense<0.000000e+00> : vector<8x128xf32>
    %16 = tpu.matmul %14, %15, %cst_14 {dimension_numbers = #tpu.dot_dimension_numbers<[1], [0], [0], [1], [0, 0, 1, 1], [], []>} : vector<8x512xf32>, vector<512x128xf32>, vector<8x128xf32> -> vector<8x128xf32>
    %c0_15 = arith.constant 0 : index
    %c0_16 = arith.constant 0 : index
    %17 = vector.load %arg7[%c0_15, %c0_16] : memref<1x128xf32, #tpu.memory_space<vmem>>, vector<1x128xf32>
    %18 = vector.broadcast %17 : vector<1x128xf32> to vector<8x128xf32>
    %19 = arith.addf %16, %18 : vector<8x128xf32>
    %cst_17 = arith.constant 0.000000e+00 : f32
    %20 = vector.broadcast %cst_17 : f32 to vector<8x128xf32>
    %21 = arith.maximumf %19, %20 : vector<8x128xf32>
    %c0_18 = arith.constant 0 : index
    %c0_19 = arith.constant 0 : index
    %22 = vector.load %arg8[%c0_18, %c0_19] : memref<128x128xf32, #tpu.memory_space<vmem>>, vector<128x128xf32>
    %cst_20 = arith.constant dense<0.000000e+00> : vector<8x128xf32>
    %23 = tpu.matmul %21, %22, %cst_20 {dimension_numbers = #tpu.dot_dimension_numbers<[1], [0], [0], [1], [0, 0, 1, 1], [], []>} : vector<8x128xf32>, vector<128x128xf32>, vector<8x128xf32> -> vector<8x128xf32>
    %c0_21 = arith.constant 0 : index
    %c0_22 = arith.constant 0 : index
    %24 = vector.load %arg9[%c0_21, %c0_22] : memref<1x128xf32, #tpu.memory_space<vmem>>, vector<1x128xf32>
    %25 = vector.broadcast %24 : vector<1x128xf32> to vector<8x128xf32>
    %26 = arith.addf %23, %25 : vector<8x128xf32>
    %c0_23 = arith.constant 0 : index
    %c0_24 = arith.constant 0 : index
    %27 = vector.load %arg10[%c0_23, %c0_24] : memref<8x128xf32, #tpu.memory_space<vmem>>, vector<8x128xf32>
    tpu.vector_store %arg10[%c0_23, %c0_24], %26 {strides = array<i32>} : memref<8x128xf32, #tpu.memory_space<vmem>>, vector<8x128xf32>,
    return
  }
  func.func @transform_0(%arg0: i32) -> (i32, i32) {
    %c0_i32 = arith.constant 0 : i32
    %c0_i32_0 = arith.constant 0 : i32
    %c0_i32_1 = arith.constant 0 : i32
    return %c0_i32, %c0_i32_0 : i32, i32
  }
  func.func @transform_1(%arg0: i32) -> (i32, i32) {
    %c0_i32 = arith.constant 0 : i32
    %c0_i32_0 = arith.constant 0 : i32
    %c0_i32_1 = arith.constant 0 : i32
    return %c0_i32, %c0_i32_0 : i32, i32
  }
  func.func @transform_2(%arg0: i32) -> (i32, i32) {
    %c0_i32 = arith.constant 0 : i32
    %c0_i32_0 = arith.constant 0 : i32
    %c0_i32_1 = arith.constant 0 : i32
    return %c0_i32, %c0_i32_0 : i32, i32
  }
  func.func @transform_3(%arg0: i32) -> (i32, i32) {
    %c0_i32 = arith.constant 0 : i32
    %c0_i32_0 = arith.constant 0 : i32
    %c0_i32_1 = arith.constant 0 : i32
    return %c0_i32, %c0_i32_0 : i32, i32
  }
  func.func @transform_4(%arg0: i32) -> (i32, i32) {
    %c0_i32 = arith.constant 0 : i32
    %c0_i32_0 = arith.constant 0 : i32
    %c0_i32_1 = arith.constant 0 : i32
    return %c0_i32, %c0_i32_0 : i32, i32
  }
  func.func @transform_5(%arg0: i32) -> (i32, i32) {
    %c0_i32 = arith.constant 0 : i32
    %c0_i32_0 = arith.constant 0 : i32
    %c0_i32_1 = arith.constant 0 : i32
    return %c0_i32, %c0_i32_0 : i32, i32
  }
  func.func @transform_6(%arg0: i32) -> (i32, i32) {
    %c0_i32 = arith.constant 0 : i32
    %c0_i32_0 = arith.constant 0 : i32
    %c0_i32_1 = arith.constant 0 : i32
    return %c0_i32, %c0_i32_0 : i32, i32
  }
  func.func @transform_7(%arg0: i32) -> (i32, i32) {
    %c0_i32 = arith.constant 0 : i32
    %c0_i32_0 = arith.constant 0 : i32
    %c0_i32_1 = arith.constant 0 : i32
    return %c0_i32, %c0_i32_0 : i32, i32
  }
  func.func @transform_8(%arg0: i32) -> (i32, i32) {
    %c0_i32 = arith.constant 0 : i32
    %c0_i32_0 = arith.constant 0 : i32
    %c0_i32_1 = arith.constant 0 : i32
    return %c0_i32, %c0_i32_0 : i32, i32
  }
  func.func @transform_9(%arg0: i32) -> (i32, i32) {
    %c0_i32 = arith.constant 0 : i32
    %c0_i32_0 = arith.constant 0 : i32
    %c0_i32_1 = arith.constant 0 : i32
    return %c0_i32, %c0_i32_0 : i32, i32
  }
}

</mosaic_0001>

<bundles_post_ra>
// kernel: model_forward.1
= control target key start
LH: loop header
LB: loop body
LE: loop exit
PB: predicated region body
PF: predicated region fallthrough
CT: control target
= control target key end

     0   :  { %14 = vsyncpa [#allocation3], 0  ;;  %s869_s0 = inlined_call_operand.vmem [shape: f32[8,64], index: 0, kind: input, shape index: {}]   ;;  %s870_s1 = inlined_call_operand.hbm [shape: f32[64,256], index: 1, kind: input, shape index: {}]   ;;  %s871_s2 = inlined_call_operand.vmem [shape: f32[1,256], index: 2, kind: input, shape index: {}]   ;;  %s872_s3 = inlined_call_operand.hbm [shape: f32[256,512], index: 3, kind: input, shape index: {}]   ;;  %s873_s4 = inlined_call_operand.vmem [shape: f32[1,512], index: 4, kind: input, shape index: {}]   ;;  %s874_s5 = inlined_call_operand.hbm [shape: f32[512,128], index: 5, kind: input, shape index: {}]   ;;  %s875_s6 = inlined_call_operand.vmem [shape: f32[1,128], index: 6, kind: input, shape index: {}]   ;;  %s876_s7 = inlined_call_operand.hbm [shape: f32[128,128], index: 7, kind: input, shape index: {}]   ;;  %s877_s8 = inlined_call_operand.vmem [shape: f32[1,128], index: 8, kind: input, shape index: {}]   ;;  %s878_s9 = inlined_call_operand.vmem [shape: f32[8,128], index: 9, kind: output, shape index: {}]  }
   0x1   :  { %15 = vsyncpa [#allocation5], 0  ;;  %s38_s11 = sshll.u32 %s872_s3, 4  ;;  %s39_s11 = int_to_ptr.hbm [resolvable:$true] %s38_s11 }
   0x2   :  { %16 = vsyncpa [#allocation8], 0  ;;  %s779_s12 = smov [#allocation4]   ;;  %s23_s16 = sshll.u32 %s870_s1, 4  ;;  %s24_s16 = int_to_ptr.hbm [resolvable:$true] %s23_s16 }
   0x3   :  { %s40_s13 = sshll.u32 %s779_s12, 4  ;;  %s780_s17 = smov 512   ;;  %s41_s13 = int_to_ptr.vmem [resolvable:$true] %s40_s13 }
   0x4   :  { %s781_s18 = smov 32   ;;  %s782_s19 = smov [#allocation2]  }
   0x5   :  { %46 = dma.hbm_to_vmem [thread:$0]  %s39_s11, 16384, %s41_s13, [#allocation5], %s780_s17, %s780_s17, %s781_s18  }
   0x6   :  { %s25_s20 = sshll.u32 %s782_s19, 4  ;;  %s783_s21 = smov 256   ;;  %s26_s20 = int_to_ptr.vmem [resolvable:$true] %s25_s20 }
   0x7   :  { %s784_s22 = smov 16   ;;  %s53_s24 = sshll.u32 %s874_s5, 4  ;;  %s54_s24 = int_to_ptr.hbm [resolvable:$true] %s53_s24 }
   0x8   :  { %31 = dma.hbm_to_vmem [thread:$0]  %s24_s16, 2048, %s26_s20, [#allocation3], %s783_s21, %s783_s21, %s784_s22  }
   0x9   :  { %s785_s25 = smov [#allocation6]   ;;  %s68_s28 = sshll.u32 %s876_s7, 4  ;;  %s69_s28 = int_to_ptr.hbm [resolvable:$true] %s68_s28 }
   0xa   :  { %s55_s26 = sshll.u32 %s785_s25, 4  ;;  %s786_s29 = smov 128   ;;  %s56_s26 = int_to_ptr.vmem [resolvable:$true] %s55_s26 }
   0xb   :  { %s787_s30 = smov 8   ;;  %s788_s10 = smov [#allocation7]  }
   0xc   :  { %61 = dma.hbm_to_vmem [thread:$0]  %s54_s24, 8192, %s56_s26, [#allocation5], %s786_s29, %s786_s29, %s787_s30  }
   0xd   :  { %s70_s11 = sshll.u32 %s788_s10, 4  ;;  %s71_s11 = int_to_ptr.vmem [resolvable:$true] %s70_s11 }
   0xe   :  { %76 = dma.hbm_to_vmem [thread:$0]  %s69_s28, 2048, %s71_s11, [#allocation8], %s786_s29, %s786_s29, %s787_s30  }
   0xf   :  { %773 = dma.done.wait [#allocation3], 2048  }
  0x10   :  { %774 = vsyncadd [#allocation3], 4294965248 }
  0x11   :  { %775 = dma.done.wait [#allocation5], 24576  }
  0x12   :  { %776 = vsyncadd [#allocation5], 4294942720 }
  0x13   :  { %777 = dma.done.wait [#allocation8], 2048  }
  0x14   :  { %778 = vsyncadd [#allocation8], 4294965248  ;;  %v110_v0 = vld [vmem:[#allocation2 + $0x70] sm:$0xff]  ;;  %v111_v1 = vld [vmem:[#allocation2 + $0x78] sm:$0xff]  ;;  %vm118_vm0 = vcmask 523264  }
  0x15   :  { %v108_v2 = vld [vmem:[#allocation2 + $0x60] sm:$0xff]  ;;  %130 = vmatpush.msra.mxu0 %v110_v0  ;;  %150 = vmatpush.msra.mxu1 %v111_v1  ;;  %v109_v3 = vld [vmem:[#allocation2 + $0x68] sm:$0xff]  ;;  %v106_v4 = vld [vmem:[#allocation2 + $0x50] sm:$0xff] }
  0x16   :  { %v107_v5 = vld [vmem:[#allocation2 + $0x58] sm:$0xff]  ;;  %v104_v6 = vld [vmem:[#allocation2 + $0x40] sm:$0xff]  ;;  %v105_v7 = vld [vmem:[#allocation2 + $0x48] sm:$0xff] }
  0x17   :  { %131 = vmatpush.msra.mxu0 %v108_v2  ;;  %151 = vmatpush.msra.mxu1 %v109_v3  ;;  %v224_v8 = vld [vmem:[#allocation4 + $0x1e0] sm:$0xff]  ;;  %v102_v9 = vld [vmem:[#allocation2 + $0x30] sm:$0xff]  ;;  %v103_v10 = vld [vmem:[#allocation2 + $0x38] sm:$0xff] }
  0x18   :  { %302 = vmatpush.msra.mxu2 %v224_v8  ;;  %v288_v11 = vld [vmem:[#allocation4 + $0x3e0] sm:$0xff]  ;;  %v101_v15 = vld [vmem:[#allocation2 + $0x28] sm:$0xff]  ;;  %v98_v19 = vld [vmem:[#allocation2 + $0x10] sm:$0xff] }
  0x19   :  { %132 = vmatpush.msra.mxu0 %v106_v4  ;;  %152 = vmatpush.msra.mxu1 %v107_v5  ;;  %v220_v12 = vld [vmem:[#allocation4 + $0x1c0] sm:$0xff]  ;;  %v99_v20 = vld [vmem:[#allocation2 + $0x18] sm:$0xff]  ;;  %v97_v24 = vld [vmem:[#allocation2 + $0x8] sm:$0xff] }
  0x1a   :  { %v284_v13 = vld [vmem:[#allocation4 + $0x3c0] sm:$0xff]  ;;  %322 = vmatpush.msra.mxu3 %v288_v11  ;;  %303 = vmatpush.msra.mxu2 %v220_v12  ;;  %v225_v26 = vld [vmem:[#allocation4 + $0x1e8] sm:$0xff]  ;;  %v290_v12 = vld [vmem:[#allocation4 + $0x3f0] sm:$0xff] }
  0x1b   :  { %133 = vmatpush.msra.mxu0 %v104_v6  ;;  %153 = vmatpush.msra.mxu1 %v105_v7  ;;  %v100_v14 = vld [vmem:[#allocation2 + $0x20] sm:$0xff]  ;;  %v289_v27 = vld [vmem:[#allocation4 + $0x3e8] sm:$0xff] }
  0x1c   :  { %v216_v16 = vld [vmem:[#allocation4 + $0x1a0] sm:$0xff]  ;;  %323 = vmatpush.msra.mxu3 %v284_v13  ;;  %v221_v30 = vld [vmem:[#allocation4 + $0x1c8] sm:$0xff]  ;;  %v222_v13 = vld [vmem:[#allocation4 + $0x1d0] sm:$0xff] }
  0x1d   :  { %134 = vmatpush.msra.mxu0 %v102_v9  ;;  %154 = vmatpush.msra.mxu1 %v103_v10  ;;  %v280_v17 = vld [vmem:[#allocation4 + $0x3a0] sm:$0xff]  ;;  %v285_v31 = vld [vmem:[#allocation4 + $0x3c8] sm:$0xff]  ;;  %v226_v9 = vld [vmem:[#allocation4 + $0x1f0] sm:$0xff] }
  0x1e   :  { %v212_v18 = vld [vmem:[#allocation4 + $0x180] sm:$0xff]  ;;  %304 = vmatpush.msra.mxu2 %v216_v16  ;;  %324 = vmatpush.msra.mxu3 %v280_v17  ;;  %v217_v34 = vld [vmem:[#allocation4 + $0x1a8] sm:$0xff]  ;;  %v286_v16 = vld [vmem:[#allocation4 + $0x3d0] sm:$0xff] }
  0x1f   :  { %135 = vmatpush.msra.mxu0 %v100_v14  ;;  %155 = vmatpush.msra.mxu1 %v101_v15  ;;  %v276_v21 = vld [vmem:[#allocation4 + $0x380] sm:$0xff]  ;;  %v281_v35 = vld [vmem:[#allocation4 + $0x3a8] sm:$0xff]  ;;  %v218_v17 = vld [vmem:[#allocation4 + $0x1b0] sm:$0xff] }
  0x20   :  { %v208_v22 = vld [vmem:[#allocation4 + $0x160] sm:$0xff]  ;;  %305 = vmatpush.msra.mxu2 %v212_v18  ;;  %325 = vmatpush.msra.mxu3 %v276_v21  ;;  %v213_v38 = vld [vmem:[#allocation4 + $0x188] sm:$0xff]  ;;  %v214_v21 = vld [vmem:[#allocation4 + $0x190] sm:$0xff] }
  0x21   :  { %v96_v23 = vld [vmem:[#allocation2] sm:$0xff]  ;;  %136 = vmatpush.msra.mxu0 %v98_v19  ;;  %156 = vmatpush.msra.mxu1 %v99_v20  ;;  %v277_v39 = vld [vmem:[#allocation4 + $0x388] sm:$0xff]  ;;  %v282_v20 = vld [vmem:[#allocation4 + $0x3b0] sm:$0xff] }
  0x22   :  { %v95_v25 = vld [vmem:[%s869_s0] sm:$0xff]  ;;  %306 = vmatpush.msra.mxu2 %v208_v22  ;;  %v209_v42 = vld [vmem:[#allocation4 + $0x168] sm:$0xff] }
  0x23   :  { %137 = vmatpush.msra.mxu0 %v96_v23  ;;  %157 = vmatpush.msra.mxu1 %v97_v24  ;;  %v272_v28 = vld [vmem:[#allocation4 + $0x360] sm:$0xff]  ;;  %v273_v43 = vld [vmem:[#allocation4 + $0x368] sm:$0xff]  ;;  %v227_v24 = vld [vmem:[#allocation4 + $0x1f8] sm:$0xff] }
  0x24   :  { %v204_v29 = vld [vmem:[#allocation4 + $0x140] sm:$0xff]  ;;  %663 = vmatmul.msk.f32.vlgmr.msra.gmra.mxu0 %vm118_vm0, %v95_v25  ;;  %664 = vmatmul.msk.f32.vlgmr.msra.gmra.mxu1 %vm118_vm0, %v95_v25  ;;  %v205_v46 = vld [vmem:[#allocation4 + $0x148] sm:$0xff]  ;;  %v291_v25 = vld [vmem:[#allocation4 + $0x3f8] sm:$0xff] }
  0x25   :  { %342 = vmatpush.msrb.mxu0 %v225_v26  ;;  %362 = vmatpush.msrb.mxu1 %v289_v27  ;;  %v268_v32 = vld [vmem:[#allocation4 + $0x340] sm:$0xff]  ;;  %v269_v47 = vld [vmem:[#allocation4 + $0x348] sm:$0xff]  ;;  %v278_v26 = vld [vmem:[#allocation4 + $0x390] sm:$0xff] }
  0x26   :  { %v200_v33 = vld [vmem:[#allocation4 + $0x120] sm:$0xff]  ;;  %326 = vmatpush.msra.mxu3 %v272_v28  ;;  %307 = vmatpush.msra.mxu2 %v204_v29  ;;  %v201_v50 = vld [vmem:[#allocation4 + $0x128] sm:$0xff]  ;;  %v210_v27 = vld [vmem:[#allocation4 + $0x170] sm:$0xff] }
  0x27   :  { %343 = vmatpush.msrb.mxu0 %v221_v30  ;;  %363 = vmatpush.msrb.mxu1 %v285_v31  ;;  %v264_v36 = vld [vmem:[#allocation4 + $0x320] sm:$0xff]  ;;  %v265_v51 = vld [vmem:[#allocation4 + $0x328] sm:$0xff]  ;;  %v223_v28 = vld [vmem:[#allocation4 + $0x1d8] sm:$0xff] }
  0x28   :  { %v196_v37 = vld [vmem:[#allocation4 + $0x100] sm:$0xff]  ;;  %327 = vmatpush.msra.mxu3 %v268_v32  ;;  %308 = vmatpush.msra.mxu2 %v200_v33  ;;  %v197_v54 = vld [vmem:[#allocation4 + $0x108] sm:$0xff]  ;;  %v287_v29 = vld [vmem:[#allocation4 + $0x3d8] sm:$0xff] }
  0x29   :  { %344 = vmatpush.msrb.mxu0 %v217_v34  ;;  %364 = vmatpush.msrb.mxu1 %v281_v35  ;;  %v260_v40 = vld [vmem:[#allocation4 + $0x300] sm:$0xff]  ;;  %v261_v55 = vld [vmem:[#allocation4 + $0x308] sm:$0xff]  ;;  %v274_v30 = vld [vmem:[#allocation4 + $0x370] sm:$0xff] }
  0x2a   :  { %v192_v41 = vld [vmem:[#allocation4 + $0xe0] sm:$0xff]  ;;  %328 = vmatpush.msra.mxu3 %v264_v36  ;;  %309 = vmatpush.msra.mxu2 %v196_v37  ;;  %v193_v58 = vld [vmem:[#allocation4 + $0xe8] sm:$0xff]  ;;  %v206_v31 = vld [vmem:[#allocation4 + $0x150] sm:$0xff] }
  0x2b   :  { %345 = vmatpush.msrb.mxu0 %v213_v38  ;;  %365 = vmatpush.msrb.mxu1 %v277_v39  ;;  %v256_v44 = vld [vmem:[#allocation4 + $0x2e0] sm:$0xff]  ;;  %v257_v59 = vld [vmem:[#allocation4 + $0x2e8] sm:$0xff]  ;;  %v219_v32 = vld [vmem:[#allocation4 + $0x1b8] sm:$0xff] }
  0x2c   :  { %v188_v45 = vld [vmem:[#allocation4 + $0xc0] sm:$0xff]  ;;  %329 = vmatpush.msra.mxu3 %v260_v40  ;;  %310 = vmatpush.msra.mxu2 %v192_v41  ;;  %v189_v62 = vld [vmem:[#allocation4 + $0xc8] sm:$0xff]  ;;  %v283_v33 = vld [vmem:[#allocation4 + $0x3b8] sm:$0xff] }
  0x2d   :  { %346 = vmatpush.msrb.mxu0 %v209_v42  ;;  %366 = vmatpush.msrb.mxu1 %v273_v43  ;;  %v252_v48 = vld [vmem:[#allocation4 + $0x2c0] sm:$0xff]  ;;  %v253_v63 = vld [vmem:[#allocation4 + $0x2c8] sm:$0xff]  ;;  %v270_v34 = vld [vmem:[#allocation4 + $0x350] sm:$0xff] }
  0x2e   :  { %v184_v49 = vld [vmem:[#allocation4 + $0xa0] sm:$0xff]  ;;  %330 = vmatpush.msra.mxu3 %v256_v44  ;;  %311 = vmatpush.msra.mxu2 %v188_v45  ;;  %v185_v2 = vld [vmem:[#allocation4 + $0xa8] sm:$0xff]  ;;  %v202_v35 = vld [vmem:[#allocation4 + $0x130] sm:$0xff] }
  0x2f   :  { %347 = vmatpush.msrb.mxu0 %v205_v46  ;;  %367 = vmatpush.msrb.mxu1 %v269_v47  ;;  %v248_v52 = vld [vmem:[#allocation4 + $0x2a0] sm:$0xff]  ;;  %v249_v3 = vld [vmem:[#allocation4 + $0x2a8] sm:$0xff]  ;;  %v215_v36 = vld [vmem:[#allocation4 + $0x198] sm:$0xff] }
  0x30   :  { %v180_v53 = vld [vmem:[#allocation4 + $0x80] sm:$0xff]  ;;  %331 = vmatpush.msra.mxu3 %v252_v48  ;;  %312 = vmatpush.msra.mxu2 %v184_v49  ;;  %v181_v6 = vld [vmem:[#allocation4 + $0x88] sm:$0xff]  ;;  %v279_v37 = vld [vmem:[#allocation4 + $0x398] sm:$0xff] }
  0x31   :  { %348 = vmatpush.msrb.mxu0 %v201_v50  ;;  %368 = vmatpush.msrb.mxu1 %v265_v51  ;;  %v244_v56 = vld [vmem:[#allocation4 + $0x280] sm:$0xff]  ;;  %v245_v7 = vld [vmem:[#allocation4 + $0x288] sm:$0xff]  ;;  %v266_v38 = vld [vmem:[#allocation4 + $0x330] sm:$0xff] }
  0x32   :  { %v176_v57 = vld [vmem:[#allocation4 + $0x60] sm:$0xff]  ;;  %332 = vmatpush.msra.mxu3 %v248_v52  ;;  %313 = vmatpush.msra.mxu2 %v180_v53  ;;  %v177_v10 = vld [vmem:[#allocation4 + $0x68] sm:$0xff]  ;;  %v198_v39 = vld [vmem:[#allocation4 + $0x110] sm:$0xff] }
  0x33   :  { %349 = vmatpush.msrb.mxu0 %v197_v54  ;;  %369 = vmatpush.msrb.mxu1 %v261_v55  ;;  %v240_v60 = vld [vmem:[#allocation4 + $0x260] sm:$0xff]  ;;  %v241_v11 = vld [vmem:[#allocation4 + $0x268] sm:$0xff]  ;;  %v211_v40 = vld [vmem:[#allocation4 + $0x178] sm:$0xff] }
  0x34   :  { %v172_v61 = vld [vmem:[#allocation4 + $0x40] sm:$0xff]  ;;  %333 = vmatpush.msra.mxu3 %v244_v56  ;;  %314 = vmatpush.msra.mxu2 %v176_v57  ;;  %v173_v14 = vld [vmem:[#allocation4 + $0x48] sm:$0xff]  ;;  %v275_v41 = vld [vmem:[#allocation4 + $0x378] sm:$0xff] }
  0x35   :  { %350 = vmatpush.msrb.mxu0 %v193_v58  ;;  %370 = vmatpush.msrb.mxu1 %v257_v59  ;;  %v236_v0 = vld [vmem:[#allocation4 + $0x240] sm:$0xff]  ;;  %v237_v15 = vld [vmem:[#allocation4 + $0x248] sm:$0xff]  ;;  %v262_v42 = vld [vmem:[#allocation4 + $0x310] sm:$0xff] }
  0x36   :  { %v168_v1 = vld [vmem:[#allocation4 + $0x20] sm:$0xff]  ;;  %334 = vmatpush.msra.mxu3 %v240_v60  ;;  %315 = vmatpush.msra.mxu2 %v172_v61  ;;  %v169_v18 = vld [vmem:[#allocation4 + $0x28] sm:$0xff]  ;;  %v194_v43 = vld [vmem:[#allocation4 + $0xf0] sm:$0xff] }
  0x37   :  { %351 = vmatpush.msrb.mxu0 %v189_v62  ;;  %371 = vmatpush.msrb.mxu1 %v253_v63  ;;  %v232_v4 = vld [vmem:[#allocation4 + $0x220] sm:$0xff]  ;;  %v233_v19 = vld [vmem:[#allocation4 + $0x228] sm:$0xff]  ;;  %v207_v44 = vld [vmem:[#allocation4 + $0x158] sm:$0xff] }
  0x38   :  { %v164_v5 = vld [vmem:[#allocation4] sm:$0xff]  ;;  %335 = vmatpush.msra.mxu3 %v236_v0  ;;  %316 = vmatpush.msra.mxu2 %v168_v1  ;;  %v165_v22 = vld [vmem:[#allocation4 + $0x8] sm:$0xff]  ;;  %v271_v45 = vld [vmem:[#allocation4 + $0x358] sm:$0xff] }
  0x39   :  { %352 = vmatpush.msrb.mxu0 %v185_v2  ;;  %372 = vmatpush.msrb.mxu1 %v249_v3  ;;  %v228_v8 = vld [vmem:[#allocation4 + $0x200] sm:$0xff]  ;;  %v229_v23 = vld [vmem:[#allocation4 + $0x208] sm:$0xff]  ;;  %v258_v46 = vld [vmem:[#allocation4 + $0x2f0] sm:$0xff] }
  0x3a   :  { %336 = vmatpush.msra.mxu3 %v232_v4  ;;  %317 = vmatpush.msra.mxu2 %v164_v5  ;;  %v203_v47 = vld [vmem:[#allocation4 + $0x138] sm:$0xff]  ;;  %v190_v53 = vld [vmem:[#allocation4 + $0xd0] sm:$0xff] }
  0x3b   :  { %353 = vmatpush.msrb.mxu0 %v181_v6  ;;  %373 = vmatpush.msrb.mxu1 %v245_v7  ;;  %v267_v48 = vld [vmem:[#allocation4 + $0x338] sm:$0xff]  ;;  %v254_v54 = vld [vmem:[#allocation4 + $0x2d0] sm:$0xff] }
  0x3c   :  { %337 = vmatpush.msra.mxu3 %v228_v8  ;;  %382 = vmatpush.msrb.mxu2 %v226_v9  ;;  %v199_v49 = vld [vmem:[#allocation4 + $0x118] sm:$0xff]  ;;  %v186_v57 = vld [vmem:[#allocation4 + $0xb0] sm:$0xff] }
  0x3d   :  { %354 = vmatpush.msrb.mxu0 %v177_v10  ;;  %374 = vmatpush.msrb.mxu1 %v241_v11  ;;  %v263_v50 = vld [vmem:[#allocation4 + $0x318] sm:$0xff]  ;;  %v250_v58 = vld [vmem:[#allocation4 + $0x2b0] sm:$0xff] }
  0x3e   :  { %402 = vmatpush.msrb.mxu3 %v290_v12  ;;  %383 = vmatpush.msrb.mxu2 %v222_v13  ;;  %v195_v51 = vld [vmem:[#allocation4 + $0xf8] sm:$0xff]  ;;  %v182_v61 = vld [vmem:[#allocation4 + $0x90] sm:$0xff] }
  0x3f   :  { %355 = vmatpush.msrb.mxu0 %v173_v14  ;;  %375 = vmatpush.msrb.mxu1 %v237_v15  ;;  %v259_v52 = vld [vmem:[#allocation4 + $0x2f8] sm:$0xff]  ;;  %v246_v62 = vld [vmem:[#allocation4 + $0x290] sm:$0xff] }
  0x40   :  { %403 = vmatpush.msrb.mxu3 %v286_v16  ;;  %384 = vmatpush.msrb.mxu2 %v218_v17  ;;  %v191_v55 = vld [vmem:[#allocation4 + $0xd8] sm:$0xff]  ;;  %v178_v1 = vld [vmem:[#allocation4 + $0x70] sm:$0xff]  ;;  %v112_v17 = vld [vmem:[%s871_s2] sm:$0x3] }
  0x41   :  { %356 = vmatpush.msrb.mxu0 %v169_v18  ;;  %376 = vmatpush.msrb.mxu1 %v233_v19  ;;  %v255_v56 = vld [vmem:[#allocation4 + $0x2d8] sm:$0xff]  ;;  %v242_v2 = vld [vmem:[#allocation4 + $0x270] sm:$0xff]  ;;  %v114_v18 = vperm.slane %v112_v17, 0  ;;  %v115_v19 = vperm.slane %v112_v17, 1 }
  0x42   :  { %404 = vmatpush.msrb.mxu3 %v282_v20  ;;  %385 = vmatpush.msrb.mxu2 %v214_v21  ;;  %v187_v59 = vld [vmem:[#allocation4 + $0xb8] sm:$0xff]  ;;  %v174_v5 = vld [vmem:[#allocation4 + $0x50] sm:$0xff] }
  0x43   :  { %357 = vmatpush.msrb.mxu0 %v165_v22  ;;  %377 = vmatpush.msrb.mxu1 %v229_v23  ;;  %v251_v60 = vld [vmem:[#allocation4 + $0x2b8] sm:$0xff]  ;;  %v238_v6 = vld [vmem:[#allocation4 + $0x250] sm:$0xff] }
  0x44   :  { %405 = vmatpush.msrb.mxu3 %v278_v26  ;;  %386 = vmatpush.msrb.mxu2 %v210_v27  ;;  %v183_v63 = vld [vmem:[#allocation4 + $0x98] sm:$0xff]  ;;  %v170_v9 = vld [vmem:[#allocation4 + $0x30] sm:$0xff] }
  0x45   :  { %422 = vmatpush.msra.mxu0 %v227_v24  ;;  %442 = vmatpush.msra.mxu1 %v291_v25  ;;  %v247_v0 = vld [vmem:[#allocation4 + $0x298] sm:$0xff]  ;;  %v234_v10 = vld [vmem:[#allocation4 + $0x230] sm:$0xff] }
  0x46   :  { %406 = vmatpush.msrb.mxu3 %v274_v30  ;;  %387 = vmatpush.msrb.mxu2 %v206_v31  ;;  %v179_v3 = vld [vmem:[#allocation4 + $0x78] sm:$0xff]  ;;  %v166_v13 = vld [vmem:[#allocation4 + $0x10] sm:$0xff] }
  0x47   :  { %423 = vmatpush.msra.mxu0 %v223_v28  ;;  %443 = vmatpush.msra.mxu1 %v287_v29  ;;  %v243_v4 = vld [vmem:[#allocation4 + $0x278] sm:$0xff]  ;;  %v230_v14 = vld [vmem:[#allocation4 + $0x210] sm:$0xff] }
  0x48   :  { %407 = vmatpush.msrb.mxu3 %v270_v34  ;;  %388 = vmatpush.msrb.mxu2 %v202_v35  ;;  %v175_v7 = vld [vmem:[#allocation4 + $0x58] sm:$0xff]  ;;  %v496_v30 = vld [vmem:[#allocation6 + $0xf0] sm:$0xff]  ;;  %v495_v34 = vld [vmem:[#allocation6 + $0xe8] sm:$0xff] }
  0x49   :  { %424 = vmatpush.msra.mxu0 %v219_v32  ;;  %444 = vmatpush.msra.mxu1 %v283_v33  ;;  %v239_v8 = vld [vmem:[#allocation4 + $0x258] sm:$0xff]  ;;  %v480_v31 = vld [vmem:[#allocation6 + $0x70] sm:$0xff]  ;;  %v479_v35 = vld [vmem:[#allocation6 + $0x68] sm:$0xff] }
  0x4a   :  { %408 = vmatpush.msrb.mxu3 %v266_v38  ;;  %389 = vmatpush.msrb.mxu2 %v198_v39  ;;  %v171_v11 = vld [vmem:[#allocation4 + $0x38] sm:$0xff]  ;;  %v528_v32 = vld [vmem:[#allocation6 + $0x1f0] sm:$0xff]  ;;  %v494_v38 = vld [vmem:[#allocation6 + $0xe0] sm:$0xff] }
  0x4b   :  { %425 = vmatpush.msra.mxu0 %v215_v36  ;;  %445 = vmatpush.msra.mxu1 %v279_v37  ;;  %v235_v12 = vld [vmem:[#allocation4 + $0x238] sm:$0xff]  ;;  %v512_v33 = vld [vmem:[#allocation6 + $0x170] sm:$0xff]  ;;  %v527_v36 = vld [vmem:[#allocation6 + $0x1e8] sm:$0xff] }
  0x4c   :  { %409 = vmatpush.msrb.mxu3 %v262_v42  ;;  %390 = vmatpush.msrb.mxu2 %v194_v43  ;;  %v167_v15 = vld [vmem:[#allocation4 + $0x18] sm:$0xff]  ;;  %v511_v37 = vld [vmem:[#allocation6 + $0x168] sm:$0xff]  ;;  %v478_v39 = vld [vmem:[#allocation6 + $0x60] sm:$0xff] }
  0x4d   :  { %426 = vmatpush.msra.mxu0 %v211_v40  ;;  %446 = vmatpush.msra.mxu1 %v275_v41  ;;  %v231_v16 = vld [vmem:[#allocation4 + $0x218] sm:$0xff]  ;;  %v526_v40 = vld [vmem:[#allocation6 + $0x1e0] sm:$0xff]  ;;  %v516_v17 = vld [vmem:[#allocation6 + $0x190] sm:$0xff] }
  0x4e   :  { %410 = vmatpush.msrb.mxu3 %v258_v46  ;;  %391 = vmatpush.msrb.mxu2 %v190_v53  ;;  %v497_v26 = vld [vmem:[#allocation6 + $0xf8] sm:$0xff]  ;;  %v510_v41 = vld [vmem:[#allocation6 + $0x160] sm:$0xff]  ;;  %v492_v46 = vld [vmem:[#allocation6 + $0xd0] sm:$0xff] }
  0x4f   :  { %427 = vmatpush.msra.mxu0 %v207_v44  ;;  %447 = vmatpush.msra.mxu1 %v271_v45  ;;  %v481_v27 = vld [vmem:[#allocation6 + $0x78] sm:$0xff]  ;;  %v474_v53 = vld [vmem:[#allocation6 + $0x40] sm:$0xff] }
  0x50   :  { %411 = vmatpush.msrb.mxu3 %v254_v54  ;;  %392 = vmatpush.msrb.mxu2 %v186_v57  ;;  %v529_v28 = vld [vmem:[#allocation6 + $0x1f8] sm:$0xff]  ;;  %v522_v54 = vld [vmem:[#allocation6 + $0x1c0] sm:$0xff]  ;;  %v488_v57 = vld [vmem:[#allocation6 + $0xb0] sm:$0xff] }
  0x51   :  { %428 = vmatpush.msra.mxu0 %v203_v47  ;;  %448 = vmatpush.msra.mxu1 %v267_v48  ;;  %v513_v29 = vld [vmem:[#allocation6 + $0x178] sm:$0xff]  ;;  %v476_v47 = vld [vmem:[#allocation6 + $0x50] sm:$0xff] }
  0x52   :  { %412 = vmatpush.msrb.mxu3 %v250_v58  ;;  %393 = vmatpush.msrb.mxu2 %v182_v61  ;;  %v493_v42 = vld [vmem:[#allocation6 + $0xd8] sm:$0xff]  ;;  %v524_v48 = vld [vmem:[#allocation6 + $0x1d0] sm:$0xff]  ;;  %v487_v58 = vld [vmem:[#allocation6 + $0xa8] sm:$0xff] }
  0x53   :  { %429 = vmatpush.msra.mxu0 %v199_v49  ;;  %449 = vmatpush.msra.mxu1 %v263_v50  ;;  %v477_v43 = vld [vmem:[#allocation6 + $0x58] sm:$0xff]  ;;  %v491_v49 = vld [vmem:[#allocation6 + $0xc8] sm:$0xff] }
  0x54   :  { %413 = vmatpush.msrb.mxu3 %v246_v62  ;;  %394 = vmatpush.msrb.mxu2 %v178_v1  ;;  %v525_v44 = vld [vmem:[#allocation6 + $0x1d8] sm:$0xff]  ;;  %v475_v50 = vld [vmem:[#allocation6 + $0x48] sm:$0xff]  ;;  %v508_v62 = vld [vmem:[#allocation6 + $0x150] sm:$0xff] }
  0x55   :  { %430 = vmatpush.msra.mxu0 %v195_v51  ;;  %450 = vmatpush.msra.mxu1 %v259_v52  ;;  %v509_v45 = vld [vmem:[#allocation6 + $0x158] sm:$0xff]  ;;  %v523_v51 = vld [vmem:[#allocation6 + $0x1c8] sm:$0xff]  ;;  %v490_v52 = vld [vmem:[#allocation6 + $0xc0] sm:$0xff] }
  0x56   :  { %414 = vmatpush.msrb.mxu3 %v242_v2  ;;  %395 = vmatpush.msrb.mxu2 %v174_v5  ;;  %v485_v61 = vld [vmem:[#allocation6 + $0x98] sm:$0xff]  ;;  %v484_v1 = vld [vmem:[#allocation6 + $0x90] sm:$0xff]  ;;  %v507_v2 = vld [vmem:[#allocation6 + $0x148] sm:$0xff] }
  0x57   :  { %431 = vmatpush.msra.mxu0 %v191_v55  ;;  %451 = vmatpush.msra.mxu1 %v255_v56  ;;  %v489_v55 = vld [vmem:[#allocation6 + $0xb8] sm:$0xff]  ;;  %v483_v5 = vld [vmem:[#allocation6 + $0x88] sm:$0xff] }
  0x58   :  { %415 = vmatpush.msrb.mxu3 %v238_v6  ;;  %396 = vmatpush.msrb.mxu2 %v170_v9  ;;  %v473_v56 = vld [vmem:[#allocation6 + $0x38] sm:$0xff]  ;;  %v506_v6 = vld [vmem:[#allocation6 + $0x140] sm:$0xff] }
  0x59   :  { %432 = vmatpush.msra.mxu0 %v187_v59  ;;  %452 = vmatpush.msra.mxu1 %v251_v60  ;;  %v486_v59 = vld [vmem:[#allocation6 + $0xa0] sm:$0xff]  ;;  %v472_v60 = vld [vmem:[#allocation6 + $0x30] sm:$0xff] }
  0x5a   :  { %416 = vmatpush.msrb.mxu3 %v234_v10  ;;  %397 = vmatpush.msrb.mxu2 %v166_v13  ;;  %v482_v9 = vld [vmem:[#allocation6 + $0x80] sm:$0xff]  ;;  %v505_v10 = vld [vmem:[#allocation6 + $0x138] sm:$0xff]  ;;  %v504_v13 = vld [vmem:[#allocation6 + $0x130] sm:$0xff] }
  0x5b   :  { %433 = vmatpush.msra.mxu0 %v183_v63  ;;  %453 = vmatpush.msra.mxu1 %v247_v0  ;;  %v521_v63 = vld [vmem:[#allocation6 + $0x1b8] sm:$0xff]  ;;  %v471_v0 = vld [vmem:[#allocation6 + $0x28] sm:$0xff] }
  0x5c   :  { %417 = vmatpush.msrb.mxu3 %v230_v14  ;;  %v517_v14 = vld [vmem:[#allocation6 + $0x198] sm:$0xff] }
  0x5d   :  { %434 = vmatpush.msra.mxu0 %v179_v3  ;;  %454 = vmatpush.msra.mxu1 %v243_v4  ;;  %v520_v3 = vld [vmem:[#allocation6 + $0x1b0] sm:$0xff]  ;;  %v470_v4 = vld [vmem:[#allocation6 + $0x20] sm:$0xff] }
  0x5f   :  { %435 = vmatpush.msra.mxu0 %v175_v7  ;;  %455 = vmatpush.msra.mxu1 %v239_v8  ;;  %v519_v7 = vld [vmem:[#allocation6 + $0x1a8] sm:$0xff]  ;;  %v469_v8 = vld [vmem:[#allocation6 + $0x18] sm:$0xff] }
  0x61   :  { %436 = vmatpush.msra.mxu0 %v171_v11  ;;  %456 = vmatpush.msra.mxu1 %v235_v12  ;;  %v518_v11 = vld [vmem:[#allocation6 + $0x1a0] sm:$0xff]  ;;  %v468_v12 = vld [vmem:[#allocation6 + $0x10] sm:$0xff] }
  0x63   :  { %437 = vmatpush.msra.mxu0 %v167_v15  ;;  %457 = vmatpush.msra.mxu1 %v231_v16  ;;  %v467_v15 = vld [vmem:[#allocation6 + $0x8] sm:$0xff] }
  0x64   :  { %v503_v16 = vld [vmem:[#allocation6 + $0x128] sm:$0xff] }
  0xa1   :  { %v139_v20 = vpop.f32.mrf.mxu0  ;;  %v159_v21 = vpop.f32.mrf.mxu1 }
  0xa2   :  { %v140_v22 = vadd.f32 %v139_v20, %v114_v18  ;;  %v160_v23 = vadd.f32 %v159_v21, %v115_v19  ;;  %v466_v18 = vld [vmem:[#allocation6] sm:$0xff]  ;;  %v515_v20 = vld [vmem:[#allocation6 + $0x188] sm:$0xff]  ;;  %v501_v21 = vld [vmem:[#allocation6 + $0x118] sm:$0xff] }
  0xa3   :  { %v502_v19 = vld [vmem:[#allocation6 + $0x120] sm:$0xff] }
  0xa4   :  { %v162_v24 = vmax.f32 %v140_v22, 0.0  ;;  %v163_v25 = vmax.f32 %v160_v23, 0.0  ;;  %v514_v22 = vld [vmem:[#allocation6 + $0x180] sm:$0xff]  ;;  %v500_v23 = vld [vmem:[#allocation6 + $0x110] sm:$0xff] }
  0xa6   :  { %318 = vmatmul.f32.vlgmr.msra.gmra.mxu2 %v162_v24  ;;  %338 = vmatmul.f32.vlgmr.msra.gmra.mxu3 %v163_v25 }
  0xa7   :  { %358 = vmatmul.f32.vlgmr.msrb.gmra.mxu0 %v162_v24  ;;  %378 = vmatmul.f32.vlgmr.msrb.gmra.mxu1 %v163_v25 }
  0xa8   :  { %554 = vmatpush.msra.mxu3 %v497_v26  ;;  %534 = vmatpush.msra.mxu2 %v481_v27  ;;  %v630_v26 = vld [vmem:[#allocation7 + $0x78] sm:$0xff]  ;;  %v629_v27 = vld [vmem:[#allocation7 + $0x70] sm:$0xff] }
  0xa9   :  { %594 = vmatpush.msrb.mxu1 %v529_v28  ;;  %574 = vmatpush.msrb.mxu0 %v513_v29  ;;  %v628_v28 = vld [vmem:[#allocation7 + $0x68] sm:$0xff]  ;;  %v627_v29 = vld [vmem:[#allocation7 + $0x60] sm:$0xff] }
  0xaa   :  { %555 = vmatpush.msra.mxu3 %v496_v30  ;;  %535 = vmatpush.msra.mxu2 %v480_v31  ;;  %v292_v30 = vld [vmem:[%s873_s4] sm:$0xf]  ;;  %v626_v31 = vld [vmem:[#allocation7 + $0x58] sm:$0xff] }
  0xab   :  { %595 = vmatpush.msrb.mxu1 %v528_v32  ;;  %575 = vmatpush.msrb.mxu0 %v512_v33  ;;  %v625_v32 = vld [vmem:[#allocation7 + $0x50] sm:$0xff]  ;;  %v295_v33 = vperm.slane %v292_v30, 1 }
  0xac   :  { %556 = vmatpush.msra.mxu3 %v495_v34  ;;  %536 = vmatpush.msra.mxu2 %v479_v35  ;;  %v624_v34 = vld [vmem:[#allocation7 + $0x48] sm:$0xff] }
  0xad   :  { %596 = vmatpush.msrb.mxu1 %v527_v36  ;;  %576 = vmatpush.msrb.mxu0 %v511_v37 }
  0xae   :  { %398 = vmatmul.f32.vlgmr.msrb.gmra.mxu2 %v162_v24  ;;  %418 = vmatmul.f32.vlgmr.msrb.gmra.mxu3 %v163_v25 }
  0xaf   :  { %438 = vmatmul.f32.vlgmr.msra.gmra.mxu0 %v162_v24  ;;  %458 = vmatmul.f32.vlgmr.msra.gmra.mxu1 %v163_v25  ;;  %v499_v24 = vld [vmem:[#allocation6 + $0x108] sm:$0xff]  ;;  %v498_v25 = vld [vmem:[#allocation6 + $0x100] sm:$0xff] }
  0xb0   :  { %557 = vmatpush.msra.mxu3 %v494_v38  ;;  %537 = vmatpush.msra.mxu2 %v478_v39  ;;  %v294_v38 = vperm.slane %v292_v30, 0 }
  0xb1   :  { %597 = vmatpush.msrb.mxu1 %v526_v40  ;;  %577 = vmatpush.msrb.mxu0 %v510_v41 }
  0xb2   :  { %558 = vmatpush.msra.mxu3 %v493_v42  ;;  %538 = vmatpush.msra.mxu2 %v477_v43  ;;  %v297_v43 = vperm.slane %v292_v30, 3 }
  0xb3   :  { %598 = vmatpush.msrb.mxu1 %v525_v44  ;;  %578 = vmatpush.msrb.mxu0 %v509_v45 }
  0xb4   :  { %559 = vmatpush.msra.mxu3 %v492_v46  ;;  %539 = vmatpush.msra.mxu2 %v476_v47 }
  0xb5   :  { %599 = vmatpush.msrb.mxu1 %v524_v48  ;;  %579 = vmatpush.msrb.mxu0 %v508_v62  ;;  %v619_v62 = vld [vmem:[#allocation7 + $0x20] sm:$0xff] }
  0xb6   :  { %560 = vmatpush.msra.mxu3 %v491_v49  ;;  %540 = vmatpush.msra.mxu2 %v475_v50  ;;  %v296_v50 = vperm.slane %v292_v30, 2 }
  0xb7   :  { %600 = vmatpush.msrb.mxu1 %v523_v51  ;;  %580 = vmatpush.msrb.mxu0 %v507_v2  ;;  %v615_v2 = vld [vmem:[#allocation7] sm:$0xff] }
  0xb8   :  { %561 = vmatpush.msra.mxu3 %v490_v52  ;;  %541 = vmatpush.msra.mxu2 %v474_v53 }
  0xb9   :  { %601 = vmatpush.msrb.mxu1 %v522_v54  ;;  %581 = vmatpush.msrb.mxu0 %v506_v6 }
  0xba   :  { %562 = vmatpush.msra.mxu3 %v489_v55  ;;  %542 = vmatpush.msra.mxu2 %v473_v56 }
  0xbb   :  { %602 = vmatpush.msrb.mxu1 %v521_v63  ;;  %582 = vmatpush.msrb.mxu0 %v505_v10  ;;  %v618_v63 = vld [vmem:[#allocation7 + $0x18] sm:$0xff] }
  0xbc   :  { %563 = vmatpush.msra.mxu3 %v488_v57  ;;  %543 = vmatpush.msra.mxu2 %v472_v60  ;;  %v621_v60 = vld [vmem:[#allocation7 + $0x30] sm:$0xff] }
  0xbd   :  { %603 = vmatpush.msrb.mxu1 %v520_v3  ;;  %583 = vmatpush.msrb.mxu0 %v504_v13  ;;  %v675_v3 = vld [vmem:[%s875_s6] ss:$0 sm:$0xff] }
  0xbe   :  { %564 = vmatpush.msra.mxu3 %v487_v58  ;;  %544 = vmatpush.msra.mxu2 %v471_v0  ;;  %v623_v58 = vld [vmem:[#allocation7 + $0x40] sm:$0xff]  ;;  %v617_v0 = vld [vmem:[#allocation7 + $0x10] sm:$0xff] }
  0xbf   :  { %604 = vmatpush.msrb.mxu1 %v519_v7  ;;  %584 = vmatpush.msrb.mxu0 %v503_v16  ;;  %v676_v13 = vld [vmem:[%s877_s8] ss:$0 sm:$0xff] }
  0xc0   :  { %565 = vmatpush.msra.mxu3 %v486_v59  ;;  %545 = vmatpush.msra.mxu2 %v470_v4  ;;  %v622_v59 = vld [vmem:[#allocation7 + $0x38] sm:$0xff] }
  0xc1   :  { %605 = vmatpush.msrb.mxu1 %v518_v11  ;;  %585 = vmatpush.msrb.mxu0 %v502_v19 }
  0xc2   :  { %566 = vmatpush.msra.mxu3 %v485_v61  ;;  %546 = vmatpush.msra.mxu2 %v469_v8  ;;  %v620_v61 = vld [vmem:[#allocation7 + $0x28] sm:$0xff] }
  0xc3   :  { %606 = vmatpush.msrb.mxu1 %v517_v14  ;;  %586 = vmatpush.msrb.mxu0 %v501_v21 }
  0xc4   :  { %567 = vmatpush.msra.mxu3 %v484_v1  ;;  %547 = vmatpush.msra.mxu2 %v468_v12  ;;  %v616_v1 = vld [vmem:[#allocation7 + $0x8] sm:$0xff] }
  0xc5   :  { %607 = vmatpush.msrb.mxu1 %v516_v17  ;;  %587 = vmatpush.msrb.mxu0 %v500_v23 }
  0xc6   :  { %568 = vmatpush.msra.mxu3 %v483_v5  ;;  %548 = vmatpush.msra.mxu2 %v467_v15 }
  0xc7   :  { %608 = vmatpush.msrb.mxu1 %v515_v20  ;;  %588 = vmatpush.msrb.mxu0 %v499_v24 }
  0xc8   :  { %569 = vmatpush.msra.mxu3 %v482_v9  ;;  %549 = vmatpush.msra.mxu2 %v466_v18 }
  0xc9   :  { %609 = vmatpush.msrb.mxu1 %v514_v22  ;;  %589 = vmatpush.msrb.mxu0 %v498_v25 }
  0xca   :  { %635 = vmatpush.msrb.mxu2 %v630_v26 }
  0xcc   :  { %636 = vmatpush.msrb.mxu2 %v629_v27 }
  0xce   :  { %637 = vmatpush.msrb.mxu2 %v628_v28 }
  0xd0   :  { %638 = vmatpush.msrb.mxu2 %v627_v29 }
  0xd2   :  { %639 = vmatpush.msrb.mxu2 %v626_v31 }
  0xd4   :  { %640 = vmatpush.msrb.mxu2 %v625_v32 }
  0xd6   :  { %641 = vmatpush.msrb.mxu2 %v624_v34 }
  0xd8   :  { %642 = vmatpush.msrb.mxu2 %v623_v58 }
  0xda   :  { %643 = vmatpush.msrb.mxu2 %v622_v59 }
  0xdc   :  { %644 = vmatpush.msrb.mxu2 %v621_v60 }
  0xde   :  { %645 = vmatpush.msrb.mxu2 %v620_v61 }
  0xe0   :  { %646 = vmatpush.msrb.mxu2 %v619_v62 }
  0xe2   :  { %647 = vmatpush.msrb.mxu2 %v618_v63 }
  0xe4   :  { %648 = vmatpush.msrb.mxu2 %v617_v0 }
  0xe6   :  { %649 = vmatpush.msrb.mxu2 %v616_v1 }
  0xe8   :  { %650 = vmatpush.msrb.mxu2 %v615_v2 }
 0x124   :  { %v359_v35 = vpop.f32.mrf.mxu0  ;;  %v379_v36 = vpop.f32.mrf.mxu1 }
 0x125   :  { %v360_v37 = vadd.f32 %v359_v35, %v295_v33 }
 0x127   :  { %v380_v39 = vadd.f32 %v379_v36, %v360_v37 }
 0x129   :  { %v463_v40 = vmax.f32 %v380_v39, 0.0  ;;  %v319_v41 = vpop.f32.mrf.mxu2  ;;  %v339_v42 = vpop.f32.mrf.mxu3 }
 0x12a   :  { %v320_v44 = vadd.f32 %v319_v41, %v294_v38 }
 0x12b   :  { %570 = vmatmul.f32.vlgmr.msra.gmra.mxu3 %v463_v40 }
 0x12c   :  { %v340_v45 = vadd.f32 %v339_v42, %v320_v44  ;;  %v439_v46 = vpop.f32.mrf.mxu0  ;;  %v459_v49 = vpop.f32.mrf.mxu1 }
 0x12d   :  { %v440_v47 = vadd.f32 %v439_v46, %v297_v43 }
 0x12e   :  { %v462_v48 = vmax.f32 %v340_v45, 0.0 }
 0x12f   :  { %v460_v51 = vadd.f32 %v459_v49, %v440_v47 }
 0x130   :  { %550 = vmatmul.f32.vlgmr.msra.gmra.mxu2 %v462_v48 }
 0x131   :  { %v465_v52 = vmax.f32 %v460_v51, 0.0  ;;  %v399_v53 = vpop.f32.mrf.mxu2  ;;  %v419_v55 = vpop.f32.mrf.mxu3 }
 0x132   :  { %v400_v54 = vadd.f32 %v399_v53, %v296_v50 }
 0x133   :  { %610 = vmatmul.f32.vlgmr.msrb.gmra.mxu1 %v465_v52 }
 0x134   :  { %v420_v56 = vadd.f32 %v419_v55, %v400_v54 }
 0x136   :  { %v464_v57 = vmax.f32 %v420_v56, 0.0 }
 0x138   :  { %590 = vmatmul.f32.vlgmr.msrb.gmra.mxu0 %v464_v57 }
 0x1ae   :  { %v571_v6 = vpop.f32.mrf.mxu3 }
 0x1b0   :  { %v611_v10 = vpop.f32.mrf.mxu1 }
 0x1b3   :  { %v551_v4 = vpop.f32.mrf.mxu2 }
 0x1b4   :  { %v552_v5 = vadd.f32 %v675_v3, %v551_v4 }
 0x1b5   :  { %v591_v8 = vpop.f32.mrf.mxu0 }
 0x1b6   :  { %v572_v7 = vadd.f32 %v571_v6, %v552_v5 }
 0x1b8   :  { %v592_v9 = vadd.f32 %v591_v8, %v572_v7 }
 0x1ba   :  { %v612_v11 = vadd.f32 %v611_v10, %v592_v9 }
 0x1bc   :  { %v614_v12 = vmax.f32 %v612_v11, 0.0 }
 0x1be   :  { %651 = vmatmul.f32.vlgmr.msrb.gmra.mxu2 %v614_v12 }
 0x241   :  { %v652_v14 = vpop.f32.mrf.mxu2 }
 0x242   :  { %v653_v15 = vadd.f32 %v676_v13, %v652_v14 }
 0x244   :  { %655 = vst [vmem:[%s878_s9] sm:$0xff] %v653_v15 }
 0x245   :  { %660 = vsyncpa [#allocation3], 1 }
 0x246   :  { %661 = vsyncpa [#allocation5], 1 }
 0x247   :  { %662 = vsyncpa [#allocation8], 1 }

</bundles_post_ra>
